<compile_context>
chip_gen: v5e
topology: v5e:2x2
jax: 0.10.0
libtpu: 0.0.40
codegen_flags: <defaults>
</compile_context>

<pallas_src>
import jax
import jax.numpy as jnp
from jax import lax
from jax.experimental import pallas as pl
from jax.experimental.pallas import tpu as pltpu

INPUT_SIZE = 6
HIDDEN_SIZE = 32
OUTPUT_SIZE = 1
NUM_LAYERS = 2  # hard-coded as two explicit layers below


def _lstm_kernel(x_ref,     # [T*Bp, D]  time-major, batch padded to Bp
                 wbig_ref,  # [2H, 8H]   fused recurrent RHS [[Wih1,Whh0],[Whh1,0]]
                 misc_ref,  # [D+4, 4H]  rows: Wih0 (D) | b0 | b1 | wfc row | bfc row
                 out_ref):  # [Bp, 1]
    f32 = jnp.float32
    TBp, D = x_ref.shape
    H = wbig_ref.shape[0] // 2
    G = 4 * H
    Bp = out_ref.shape[0]
    T = TBp // Bp

    # ---------------- hoisted constants (off the recurrent chain) ----------
    # sigmoid(p) = 0.5*(tanh(0.5*p)+1): pre-scale i/f/o gate columns by 0.5,
    # keep the g-gate (tanh) columns at 1.0.  PyTorch gate order: (i, f, g, o).
    lane = lax.broadcasted_iota(jnp.int32, (1, G), 1)
    is_g = (lane >= 2 * H) & (lane < 3 * H)
    half_row = jnp.where(is_g, 1.0, 0.5).astype(f32)            # [1, G]
    act_mul = jnp.broadcast_to(half_row, (Bp, G))                # 1.0 on g, 0.5 else
    act_add = jnp.broadcast_to(1.0 - half_row, (Bp, G))          # 0.0 on g, 0.5 else

    col2 = lax.broadcasted_iota(jnp.int32, (1, 2 * G), 1)
    is_g2 = (((col2 >= 2 * H) & (col2 < 3 * H)) |
             ((col2 >= G + 2 * H) & (col2 < G + 3 * H)))
    wbig = wbig_ref[...] * jnp.where(is_g2, 1.0, 0.5).astype(f32)  # [2H, 2G]

    wih0 = misc_ref[0:D, :]                      # [D, G]
    b0 = misc_ref[D:D + 1, :]                    # [1, G]
    b1 = jnp.broadcast_to(misc_ref[D + 1:D + 2, :] * half_row, (Bp, G))
    wfc_row = misc_ref[D + 2:D + 3, 0:H]         # [1, H]
    bfc = misc_ref[D + 3:D + 4, 0:1]             # [1, 1]

    # layer-0 input projection for ALL timesteps: one MXU call, off the chain.
    gin0 = (jnp.dot(x_ref[...], wih0, preferred_element_type=f32)
            + b0) * half_row                                     # [T*Bp, G]

    # ---------------- per-cell update (gates already pre-scaled) -----------
    def cell(pre, c_prev, first):
        a = jnp.tanh(pre) * act_mul + act_add        # i/f/o = sigmoid, g = tanh
        i_g = a[:, 0 * H:1 * H]
        f_g = a[:, 1 * H:2 * H]
        g_g = a[:, 2 * H:3 * H]
        o_g = a[:, 3 * H:4 * H]
        c_new = i_g * g_g if first else f_g * c_prev + i_g * g_g
        h_new = o_g * jnp.tanh(c_new)
        return h_new, c_new

    # ---------------- fully-unrolled recurrence ----------------------------
    z = jnp.zeros((Bp, H), f32)
    h1, c1, h2, c2 = z, z, z, z
    rec0 = None                         # h1(t-1) @ Whh0 (already pre-scaled)
    for t in range(T):
        first = (t == 0)
        pre0 = gin0[t * Bp:(t + 1) * Bp, :]
        if not first:
            pre0 = pre0 + rec0
        h1, c1 = cell(pre0, c1, first)
        # ONE fused matmul: layer-1 gates (cols 0:G) and the next step's
        # layer-0 recurrent term (cols G:2G).
        fused = jnp.dot(jnp.concatenate([h1, h2], axis=1), wbig,
                        preferred_element_type=f32)              # [Bp, 2G]
        rec0 = fused[:, G:2 * G]
        h2, c2 = cell(fused[:, 0:G] + b1, c2, first)

    # final Linear on the last timestep's top-layer hidden state
    # (elementwise mul + lane reduction: VPU/XLU, tiny, full f32).
    out_ref[...] = jnp.sum(h2 * wfc_row, axis=1, keepdims=True) + bfc


def lstm_model_forward(x, params):
    """x: [B, T, D] float32 (batch_first, as in PyTorch). Returns [B, 1]."""
    B, T, D = x.shape
    H, G = HIDDEN_SIZE, 4 * HIDDEN_SIZE
    Bp = ((B + 7) // 8) * 8             # pad batch to a full (8, .) sublane tile

    # time-major, batch-padded input.
    x_p = jnp.pad(x, ((0, Bp - B), (0, 0), (0, 0)))
    x_flat = jnp.transpose(x_p, (1, 0, 2)).reshape(T * Bp, D)

    # fused block-diagonal recurrent RHS: [h1 | h2_prev] @ [[Wih1, Whh0],
    #                                                       [Whh1,   0 ]]
    wbig = jnp.concatenate([
        jnp.concatenate([params["wih1"], params["whh0"]], axis=1),
        jnp.concatenate([params["whh1"], jnp.zeros((H, G), jnp.float32)],
                        axis=1)], axis=0)                        # [2H, 2G]

    # misc param slab: rows 0:D = Wih0, D = b0, D+1 = b1, D+2 = wfc, D+3 = bfc.
    wfc_row = jnp.zeros((1, G), jnp.float32).at[0, :H].set(params["wfc"][:, 0])
    bfc_row = jnp.zeros((1, G), jnp.float32).at[0, 0].set(params["bfc"][0, 0])
    misc = jnp.concatenate([params["wih0"], params["b0"], params["b1"],
                            wfc_row, bfc_row], axis=0)           # [D+4, G]

    vmem = pl.BlockSpec(memory_space=pltpu.MemorySpace.VMEM)
    out_p = pl.pallas_call(
        _lstm_kernel,
        out_shape=jax.ShapeDtypeStruct((Bp, OUTPUT_SIZE), jnp.float32),
        in_specs=[vmem, vmem, vmem],
        out_specs=vmem,
    )(x_flat, wbig, misc)
    return out_p[:B]


def init_params(key):
    """Deterministic parameter init matching PyTorch shapes.

    nn.LSTM(l): weight_ih_l{l} [4H, in], weight_hh_l{l} [4H, H],
                bias_ih_l{l} [4H], bias_hh_l{l} [4H]
    nn.Linear : weight [1, H], bias [1]
    Stored transposed ([in, 4H]) with the two bias vectors folded together
    (they are always summed in the forward pass).
    """
    H, D = HIDDEN_SIZE, INPUT_SIZE
    k = 1.0 / jnp.sqrt(jnp.float32(H))
    keys = jax.random.split(key, 11)

    def u(kk, shape):
        return jax.random.uniform(kk, shape, jnp.float32, -k, k)

    wih0 = u(keys[0], (4 * H, D)).T          # -> [D, 4H]
    whh0 = u(keys[1], (4 * H, H)).T          # -> [H, 4H]
    b0 = (u(keys[2], (4 * H,)) + u(keys[3], (4 * H,))).reshape(1, 4 * H)
    wih1 = u(keys[4], (4 * H, H)).T          # -> [H, 4H]
    whh1 = u(keys[5], (4 * H, H)).T          # -> [H, 4H]
    b1 = (u(keys[6], (4 * H,)) + u(keys[7], (4 * H,))).reshape(1, 4 * H)

    kf = 1.0 / jnp.sqrt(jnp.float32(H))
    wfc = jax.random.uniform(keys[8], (OUTPUT_SIZE, H), jnp.float32, -kf, kf).T  # [H,1]
    bfc = jax.random.uniform(keys[9], (OUTPUT_SIZE,), jnp.float32, -kf, kf).reshape(1, 1)

    return dict(wih0=wih0, whh0=whh0, b0=b0,
                wih1=wih1, whh1=whh1, b1=b1,
                wfc=wfc, bfc=bfc)


def reference_forward(x, params):
    """Pure-JAX reference with PyTorch LSTM semantics (for validation)."""
    B, T, D = x.shape
    H = HIDDEN_SIZE

    def cell(x_t, h_prev, c_prev, wih, whh, b):
        gates = x_t @ wih + h_prev @ whh + b
        i_g = jax.nn.sigmoid(gates[:, 0 * H:1 * H])
        f_g = jax.nn.sigmoid(gates[:, 1 * H:2 * H])
        g_g = jnp.tanh(gates[:, 2 * H:3 * H])
        o_g = jax.nn.sigmoid(gates[:, 3 * H:4 * H])
        c_new = f_g * c_prev + i_g * g_g
        return o_g * jnp.tanh(c_new), c_new

    def scan_body(carry, x_t):
        h1, c1, h2, c2 = carry
        h1, c1 = cell(x_t, h1, c1, params["wih0"], params["whh0"], params["b0"])
        h2, c2 = cell(h1, h2, c2, params["wih1"], params["whh1"], params["b1"])
        return (h1, c1, h2, c2), None

    z = jnp.zeros((B, H), jnp.float32)
    (h1, c1, h2, c2), _ = lax.scan(scan_body, (z, z, z, z),
                                   jnp.transpose(x, (1, 0, 2)))
    return h2 @ params["wfc"] + params["bfc"]


if __name__ == "__main__":
    key = jax.random.PRNGKey(0)
    kx, kp = jax.random.split(key)

    B, T = 2, 8
    x = jax.random.normal(kx, (B, T, INPUT_SIZE), jnp.float32)
    params = init_params(kp)

    out = jax.block_until_ready(jax.jit(lstm_model_forward)(x, params))
    ref = jax.block_until_ready(reference_forward(x, params))

    assert out.shape == (B, OUTPUT_SIZE)
    # bf16 MXU operands (f32 accumulation) feed back through the recurrence,
    # and sigmoid is evaluated as 0.5*(tanh(p/2)+1); both differ from the
    # fp32 reference by a few 1e-5s after T=8 steps.
    assert jnp.allclose(out, ref, atol=2e-4, rtol=2e-4), (out, ref)

    print("KERNEL_OK")
</pallas_src>

<mosaic_0001>
module attributes {stable_mosaic.version = 11 : i64} {
  func.func @_lstm_kernel(%arg0: memref<64x6xf32, #tpu.memory_space<vmem>>, %arg1: memref<64x256xf32, #tpu.memory_space<vmem>>, %arg2: memref<10x128xf32, #tpu.memory_space<vmem>>, %arg3: memref<8x1xf32, #tpu.memory_space<vmem>>) attributes {dimension_semantics = [], scalar_prefetch = 0 : i64, scratch_operands = 0 : i64, tpu.core_type = #tpu.core_type<tc>} {
    %0 = tpu.iota {dimensions = array<i32: 1>} : vector<1x128xi32>
    %c64_i32 = arith.constant 64 : i32
    %1 = vector.broadcast %c64_i32 : i32 to vector<1x128xi32>
    %2 = arith.cmpi sge, %0, %1 : vector<1x128xi32>
    %c96_i32 = arith.constant 96 : i32
    %3 = vector.broadcast %c96_i32 : i32 to vector<1x128xi32>
    %4 = arith.cmpi slt, %0, %3 : vector<1x128xi32>
    %5 = arith.andi %2, %4 : vector<1x128xi1>
    %cst = arith.constant 1.000000e+00 : f32
    %cst_0 = arith.constant 5.000000e-01 : f32
    %6 = vector.broadcast %cst : f32 to vector<1x128xf32>
    %7 = vector.broadcast %cst_0 : f32 to vector<1x128xf32>
    %8 = arith.select %5, %6, %7 : vector<1x128xi1>, vector<1x128xf32>
    %9 = vector.shape_cast %8 : vector<1x128xf32> to vector<1x128xf32>
    %10 = vector.broadcast %9 : vector<1x128xf32> to vector<8x128xf32>
    %cst_1 = arith.constant 1.000000e+00 : f32
    %11 = vector.broadcast %cst_1 : f32 to vector<1x128xf32>
    %12 = arith.subf %11, %8 : vector<1x128xf32>
    %13 = vector.shape_cast %12 : vector<1x128xf32> to vector<1x128xf32>
    %14 = vector.broadcast %13 : vector<1x128xf32> to vector<8x128xf32>
    %15 = tpu.iota {dimensions = array<i32: 1>} : vector<1x256xi32>
    %c64_i32_2 = arith.constant 64 : i32
    %16 = vector.broadcast %c64_i32_2 : i32 to vector<1x256xi32>
    %17 = arith.cmpi sge, %15, %16 : vector<1x256xi32>
    %c96_i32_3 = arith.constant 96 : i32
    %18 = vector.broadcast %c96_i32_3 : i32 to vector<1x256xi32>
    %19 = arith.cmpi slt, %15, %18 : vector<1x256xi32>
    %20 = arith.andi %17, %19 : vector<1x256xi1>
    %c192_i32 = arith.constant 192 : i32
    %21 = vector.broadcast %c192_i32 : i32 to vector<1x256xi32>
    %22 = arith.cmpi sge, %15, %21 : vector<1x256xi32>
    %c224_i32 = arith.constant 224 : i32
    %23 = vector.broadcast %c224_i32 : i32 to vector<1x256xi32>
    %24 = arith.cmpi slt, %15, %23 : vector<1x256xi32>
    %25 = arith.andi %22, %24 : vector<1x256xi1>
    %26 = arith.ori %20, %25 : vector<1x256xi1>
    %c0 = arith.constant 0 : index
    %c0_4 = arith.constant 0 : index
    %27 = vector.load %arg1[%c0, %c0_4] : memref<64x256xf32, #tpu.memory_space<vmem>>, vector<64x256xf32>
    %cst_5 = arith.constant 1.000000e+00 : f32
    %cst_6 = arith.constant 5.000000e-01 : f32
    %28 = vector.broadcast %cst_5 : f32 to vector<1x256xf32>
    %29 = vector.broadcast %cst_6 : f32 to vector<1x256xf32>
    %30 = arith.select %26, %28, %29 : vector<1x256xi1>, vector<1x256xf32>
    %31 = vector.broadcast %30 : vector<1x256xf32> to vector<64x256xf32>
    %32 = arith.mulf %27, %31 : vector<64x256xf32>
    %c0_7 = arith.constant 0 : index
    %c0_8 = arith.constant 0 : index
    %33 = vector.load %arg2[%c0_7, %c0_8] : memref<10x128xf32, #tpu.memory_space<vmem>>, vector<6x128xf32>
    %c6 = arith.constant 6 : index
    %c0_9 = arith.constant 0 : index
    %34 = vector.load %arg2[%c6, %c0_9] : memref<10x128xf32, #tpu.memory_space<vmem>>, vector<1x128xf32>
    %c7 = arith.constant 7 : index
    %c0_10 = arith.constant 0 : index
    %35 = vector.load %arg2[%c7, %c0_10] : memref<10x128xf32, #tpu.memory_space<vmem>>, vector<1x128xf32>
    %36 = arith.mulf %35, %8 : vector<1x128xf32>
    %37 = vector.shape_cast %36 : vector<1x128xf32> to vector<1x128xf32>
    %38 = vector.broadcast %37 : vector<1x128xf32> to vector<8x128xf32>
    %c8 = arith.constant 8 : index
    %c0_11 = arith.constant 0 : index
    %39 = vector.load %arg2[%c8, %c0_11] : memref<10x128xf32, #tpu.memory_space<vmem>>, vector<1x32xf32>
    %c9 = arith.constant 9 : index
    %c0_12 = arith.constant 0 : index
    %40 = vector.load %arg2[%c9, %c0_12] : memref<10x128xf32, #tpu.memory_space<vmem>>, vector<1x1xf32>
    %c0_13 = arith.constant 0 : index
    %c0_14 = arith.constant 0 : index
    %41 = vector.load %arg0[%c0_13, %c0_14] : memref<64x6xf32, #tpu.memory_space<vmem>>, vector<64x6xf32>
    %cst_15 = arith.constant dense<0.000000e+00> : vector<64x128xf32>
    %42 = tpu.matmul %41, %33, %cst_15 {dimension_numbers = #tpu.dot_dimension_numbers<[1], [0], [0], [1], [0, 0, 1, 1], [], []>} : vector<64x6xf32>, vector<6x128xf32>, vector<64x128xf32> -> vector<64x128xf32>
    %43 = vector.broadcast %34 : vector<1x128xf32> to vector<64x128xf32>
    %44 = arith.addf %42, %43 : vector<64x128xf32>
    %45 = vector.broadcast %8 : vector<1x128xf32> to vector<64x128xf32>
    %46 = arith.mulf %44, %45 : vector<64x128xf32>
    %cst_16 = arith.constant 0.000000e+00 : f32
    %47 = vector.broadcast %cst_16 : f32 to vector<8x32xf32>
    %48 = vector.extract_strided_slice %46 {offsets = [0, 0], sizes = [8, 128], strides = [1, 1]} : vector<64x128xf32> to vector<8x128xf32>
    %49 = math.tanh %48 : vector<8x128xf32>
    %50 = arith.mulf %49, %10 : vector<8x128xf32>
    %51 = arith.addf %50, %14 : vector<8x128xf32>
    %52 = vector.extract_strided_slice %51 {offsets = [0, 0], sizes = [8, 32], strides = [1, 1]} : vector<8x128xf32> to vector<8x32xf32>
    %53 = vector.extract_strided_slice %51 {offsets = [0, 64], sizes = [8, 32], strides = [1, 1]} : vector<8x128xf32> to vector<8x32xf32>
    %54 = vector.extract_strided_slice %51 {offsets = [0, 96], sizes = [8, 32], strides = [1, 1]} : vector<8x128xf32> to vector<8x32xf32>
    %55 = arith.mulf %52, %53 : vector<8x32xf32>
    %56 = math.tanh %55 : vector<8x32xf32>
    %57 = arith.mulf %54, %56 : vector<8x32xf32>
    %58 = tpu.concatenate %57, %47 in 1 : vector<8x32xf32>, vector<8x32xf32> -> vector<8x64xf32>
    %cst_17 = arith.constant dense<0.000000e+00> : vector<8x256xf32>
    %59 = tpu.matmul %58, %32, %cst_17 {dimension_numbers = #tpu.dot_dimension_numbers<[1], [0], [0], [1], [0, 0, 1, 1], [], []>} : vector<8x64xf32>, vector<64x256xf32>, vector<8x256xf32> -> vector<8x256xf32>
    %60 = vector.extract_strided_slice %59 {offsets = [0, 128], sizes = [8, 128], strides = [1, 1]} : vector<8x256xf32> to vector<8x128xf32>
    %61 = vector.extract_strided_slice %59 {offsets = [0, 0], sizes = [8, 128], strides = [1, 1]} : vector<8x256xf32> to vector<8x128xf32>
    %62 = arith.addf %61, %38 : vector<8x128xf32>
    %63 = math.tanh %62 : vector<8x128xf32>
    %64 = arith.mulf %63, %10 : vector<8x128xf32>
    %65 = arith.addf %64, %14 : vector<8x128xf32>
    %66 = vector.extract_strided_slice %65 {offsets = [0, 0], sizes = [8, 32], strides = [1, 1]} : vector<8x128xf32> to vector<8x32xf32>
    %67 = vector.extract_strided_slice %65 {offsets = [0, 64], sizes = [8, 32], strides = [1, 1]} : vector<8x128xf32> to vector<8x32xf32>
    %68 = vector.extract_strided_slice %65 {offsets = [0, 96], sizes = [8, 32], strides = [1, 1]} : vector<8x128xf32> to vector<8x32xf32>
    %69 = arith.mulf %66, %67 : vector<8x32xf32>
    %70 = math.tanh %69 : vector<8x32xf32>
    %71 = arith.mulf %68, %70 : vector<8x32xf32>
    %72 = vector.extract_strided_slice %46 {offsets = [8, 0], sizes = [8, 128], strides = [1, 1]} : vector<64x128xf32> to vector<8x128xf32>
    %73 = arith.addf %72, %60 : vector<8x128xf32>
    %74 = math.tanh %73 : vector<8x128xf32>
    %75 = arith.mulf %74, %10 : vector<8x128xf32>
    %76 = arith.addf %75, %14 : vector<8x128xf32>
    %77 = vector.extract_strided_slice %76 {offsets = [0, 0], sizes = [8, 32], strides = [1, 1]} : vector<8x128xf32> to vector<8x32xf32>
    %78 = vector.extract_strided_slice %76 {offsets = [0, 32], sizes = [8, 32], strides = [1, 1]} : vector<8x128xf32> to vector<8x32xf32>
    %79 = vector.extract_strided_slice %76 {offsets = [0, 64], sizes = [8, 32], strides = [1, 1]} : vector<8x128xf32> to vector<8x32xf32>
    %80 = vector.extract_strided_slice %76 {offsets = [0, 96], sizes = [8, 32], strides = [1, 1]} : vector<8x128xf32> to vector<8x32xf32>
    %81 = arith.mulf %78, %55 : vector<8x32xf32>
    %82 = arith.mulf %77, %79 : vector<8x32xf32>
    %83 = arith.addf %81, %82 : vector<8x32xf32>
    %84 = math.tanh %83 : vector<8x32xf32>
    %85 = arith.mulf %80, %84 : vector<8x32xf32>
    %86 = tpu.concatenate %85, %71 in 1 : vector<8x32xf32>, vector<8x32xf32> -> vector<8x64xf32>
    %cst_18 = arith.constant dense<0.000000e+00> : vector<8x256xf32>
    %87 = tpu.matmul %86, %32, %cst_18 {dimension_numbers = #tpu.dot_dimension_numbers<[1], [0], [0], [1], [0, 0, 1, 1], [], []>} : vector<8x64xf32>, vector<64x256xf32>, vector<8x256xf32> -> vector<8x256xf32>
    %88 = vector.extract_strided_slice %87 {offsets = [0, 128], sizes = [8, 128], strides = [1, 1]} : vector<8x256xf32> to vector<8x128xf32>
    %89 = vector.extract_strided_slice %87 {offsets = [0, 0], sizes = [8, 128], strides = [1, 1]} : vector<8x256xf32> to vector<8x128xf32>
    %90 = arith.addf %89, %38 : vector<8x128xf32>
    %91 = math.tanh %90 : vector<8x128xf32>
    %92 = arith.mulf %91, %10 : vector<8x128xf32>
    %93 = arith.addf %92, %14 : vector<8x128xf32>
    %94 = vector.extract_strided_slice %93 {offsets = [0, 0], sizes = [8, 32], strides = [1, 1]} : vector<8x128xf32> to vector<8x32xf32>
    %95 = vector.extract_strided_slice %93 {offsets = [0, 32], sizes = [8, 32], strides = [1, 1]} : vector<8x128xf32> to vector<8x32xf32>
    %96 = vector.extract_strided_slice %93 {offsets = [0, 64], sizes = [8, 32], strides = [1, 1]} : vector<8x128xf32> to vector<8x32xf32>
    %97 = vector.extract_strided_slice %93 {offsets = [0, 96], sizes = [8, 32], strides = [1, 1]} : vector<8x128xf32> to vector<8x32xf32>
    %98 = arith.mulf %95, %69 : vector<8x32xf32>
    %99 = arith.mulf %94, %96 : vector<8x32xf32>
    %100 = arith.addf %98, %99 : vector<8x32xf32>
    %101 = math.tanh %100 : vector<8x32xf32>
    %102 = arith.mulf %97, %101 : vector<8x32xf32>
    %103 = vector.extract_strided_slice %46 {offsets = [16, 0], sizes = [8, 128], strides = [1, 1]} : vector<64x128xf32> to vector<8x128xf32>
    %104 = arith.addf %103, %88 : vector<8x128xf32>
    %105 = math.tanh %104 : vector<8x128xf32>
    %106 = arith.mulf %105, %10 : vector<8x128xf32>
    %107 = arith.addf %106, %14 : vector<8x128xf32>
    %108 = vector.extract_strided_slice %107 {offsets = [0, 0], sizes = [8, 32], strides = [1, 1]} : vector<8x128xf32> to vector<8x32xf32>
    %109 = vector.extract_strided_slice %107 {offsets = [0, 32], sizes = [8, 32], strides = [1, 1]} : vector<8x128xf32> to vector<8x32xf32>
    %110 = vector.extract_strided_slice %107 {offsets = [0, 64], sizes = [8, 32], strides = [1, 1]} : vector<8x128xf32> to vector<8x32xf32>
    %111 = vector.extract_strided_slice %107 {offsets = [0, 96], sizes = [8, 32], strides = [1, 1]} : vector<8x128xf32> to vector<8x32xf32>
    %112 = arith.mulf %109, %83 : vector<8x32xf32>
    %113 = arith.mulf %108, %110 : vector<8x32xf32>
    %114 = arith.addf %112, %113 : vector<8x32xf32>
    %115 = math.tanh %114 : vector<8x32xf32>
    %116 = arith.mulf %111, %115 : vector<8x32xf32>
    %117 = tpu.concatenate %116, %102 in 1 : vector<8x32xf32>, vector<8x32xf32> -> vector<8x64xf32>
    %cst_19 = arith.constant dense<0.000000e+00> : vector<8x256xf32>
    %118 = tpu.matmul %117, %32, %cst_19 {dimension_numbers = #tpu.dot_dimension_numbers<[1], [0], [0], [1], [0, 0, 1, 1], [], []>} : vector<8x64xf32>, vector<64x256xf32>, vector<8x256xf32> -> vector<8x256xf32>
    %119 = vector.extract_strided_slice %118 {offsets = [0, 128], sizes = [8, 128], strides = [1, 1]} : vector<8x256xf32> to vector<8x128xf32>
    %120 = vector.extract_strided_slice %118 {offsets = [0, 0], sizes = [8, 128], strides = [1, 1]} : vector<8x256xf32> to vector<8x128xf32>
    %121 = arith.addf %120, %38 : vector<8x128xf32>
    %122 = math.tanh %121 : vector<8x128xf32>
    %123 = arith.mulf %122, %10 : vector<8x128xf32>
    %124 = arith.addf %123, %14 : vector<8x128xf32>
    %125 = vector.extract_strided_slice %124 {offsets = [0, 0], sizes = [8, 32], strides = [1, 1]} : vector<8x128xf32> to vector<8x32xf32>
    %126 = vector.extract_strided_slice %124 {offsets = [0, 32], sizes = [8, 32], strides = [1, 1]} : vector<8x128xf32> to vector<8x32xf32>
    %127 = vector.extract_strided_slice %124 {offsets = [0, 64], sizes = [8, 32], strides = [1, 1]} : vector<8x128xf32> to vector<8x32xf32>
    %128 = vector.extract_strided_slice %124 {offsets = [0, 96], sizes = [8, 32], strides = [1, 1]} : vector<8x128xf32> to vector<8x32xf32>
    %129 = arith.mulf %126, %100 : vector<8x32xf32>
    %130 = arith.mulf %125, %127 : vector<8x32xf32>
    %131 = arith.addf %129, %130 : vector<8x32xf32>
    %132 = math.tanh %131 : vector<8x32xf32>
    %133 = arith.mulf %128, %132 : vector<8x32xf32>
    %134 = vector.extract_strided_slice %46 {offsets = [24, 0], sizes = [8, 128], strides = [1, 1]} : vector<64x128xf32> to vector<8x128xf32>
    %135 = arith.addf %134, %119 : vector<8x128xf32>
    %136 = math.tanh %135 : vector<8x128xf32>
    %137 = arith.mulf %136, %10 : vector<8x128xf32>
    %138 = arith.addf %137, %14 : vector<8x128xf32>
    %139 = vector.extract_strided_slice %138 {offsets = [0, 0], sizes = [8, 32], strides = [1, 1]} : vector<8x128xf32> to vector<8x32xf32>
    %140 = vector.extract_strided_slice %138 {offsets = [0, 32], sizes = [8, 32], strides = [1, 1]} : vector<8x128xf32> to vector<8x32xf32>
    %141 = vector.extract_strided_slice %138 {offsets = [0, 64], sizes = [8, 32], strides = [1, 1]} : vector<8x128xf32> to vector<8x32xf32>
    %142 = vector.extract_strided_slice %138 {offsets = [0, 96], sizes = [8, 32], strides = [1, 1]} : vector<8x128xf32> to vector<8x32xf32>
    %143 = arith.mulf %140, %114 : vector<8x32xf32>
    %144 = arith.mulf %139, %141 : vector<8x32xf32>
    %145 = arith.addf %143, %144 : vector<8x32xf32>
    %146 = math.tanh %145 : vector<8x32xf32>
    %147 = arith.mulf %142, %146 : vector<8x32xf32>
    %148 = tpu.concatenate %147, %133 in 1 : vector<8x32xf32>, vector<8x32xf32> -> vector<8x64xf32>
    %cst_20 = arith.constant dense<0.000000e+00> : vector<8x256xf32>
    %149 = tpu.matmul %148, %32, %cst_20 {dimension_numbers = #tpu.dot_dimension_numbers<[1], [0], [0], [1], [0, 0, 1, 1], [], []>} : vector<8x64xf32>, vector<64x256xf32>, vector<8x256xf32> -> vector<8x256xf32>
    %150 = vector.extract_strided_slice %149 {offsets = [0, 128], sizes = [8, 128], strides = [1, 1]} : vector<8x256xf32> to vector<8x128xf32>
    %151 = vector.extract_strided_slice %149 {offsets = [0, 0], sizes = [8, 128], strides = [1, 1]} : vector<8x256xf32> to vector<8x128xf32>
    %152 = arith.addf %151, %38 : vector<8x128xf32>
    %153 = math.tanh %152 : vector<8x128xf32>
    %154 = arith.mulf %153, %10 : vector<8x128xf32>
    %155 = arith.addf %154, %14 : vector<8x128xf32>
    %156 = vector.extract_strided_slice %155 {offsets = [0, 0], sizes = [8, 32], strides = [1, 1]} : vector<8x128xf32> to vector<8x32xf32>
    %157 = vector.extract_strided_slice %155 {offsets = [0, 32], sizes = [8, 32], strides = [1, 1]} : vector<8x128xf32> to vector<8x32xf32>
    %158 = vector.extract_strided_slice %155 {offsets = [0, 64], sizes = [8, 32], strides = [1, 1]} : vector<8x128xf32> to vector<8x32xf32>
    %159 = vector.extract_strided_slice %155 {offsets = [0, 96], sizes = [8, 32], strides = [1, 1]} : vector<8x128xf32> to vector<8x32xf32>
    %160 = arith.mulf %157, %131 : vector<8x32xf32>
    %161 = arith.mulf %156, %158 : vector<8x32xf32>
    %162 = arith.addf %160, %161 : vector<8x32xf32>
    %163 = math.tanh %162 : vector<8x32xf32>
    %164 = arith.mulf %159, %163 : vector<8x32xf32>
    %165 = vector.extract_strided_slice %46 {offsets = [32, 0], sizes = [8, 128], strides = [1, 1]} : vector<64x128xf32> to vector<8x128xf32>
    %166 = arith.addf %165, %150 : vector<8x128xf32>
    %167 = math.tanh %166 : vector<8x128xf32>
    %168 = arith.mulf %167, %10 : vector<8x128xf32>
    %169 = arith.addf %168, %14 : vector<8x128xf32>
    %170 = vector.extract_strided_slice %169 {offsets = [0, 0], sizes = [8, 32], strides = [1, 1]} : vector<8x128xf32> to vector<8x32xf32>
    %171 = vector.extract_strided_slice %169 {offsets = [0, 32], sizes = [8, 32], strides = [1, 1]} : vector<8x128xf32> to vector<8x32xf32>
    %172 = vector.extract_strided_slice %169 {offsets = [0, 64], sizes = [8, 32], strides = [1, 1]} : vector<8x128xf32> to vector<8x32xf32>
    %173 = vector.extract_strided_slice %169 {offsets = [0, 96], sizes = [8, 32], strides = [1, 1]} : vector<8x128xf32> to vector<8x32xf32>
    %174 = arith.mulf %171, %145 : vector<8x32xf32>
    %175 = arith.mulf %170, %172 : vector<8x32xf32>
    %176 = arith.addf %174, %175 : vector<8x32xf32>
    %177 = math.tanh %176 : vector<8x32xf32>
    %178 = arith.mulf %173, %177 : vector<8x32xf32>
    %179 = tpu.concatenate %178, %164 in 1 : vector<8x32xf32>, vector<8x32xf32> -> vector<8x64xf32>
    %cst_21 = arith.constant dense<0.000000e+00> : vector<8x256xf32>
    %180 = tpu.matmul %179, %32, %cst_21 {dimension_numbers = #tpu.dot_dimension_numbers<[1], [0], [0], [1], [0, 0, 1, 1], [], []>} : vector<8x64xf32>, vector<64x256xf32>, vector<8x256xf32> -> vector<8x256xf32>
    %181 = vector.extract_strided_slice %180 {offsets = [0, 128], sizes = [8, 128], strides = [1, 1]} : vector<8x256xf32> to vector<8x128xf32>
    %182 = vector.extract_strided_slice %180 {offsets = [0, 0], sizes = [8, 128], strides = [1, 1]} : vector<8x256xf32> to vector<8x128xf32>
    %183 = arith.addf %182, %38 : vector<8x128xf32>
    %184 = math.tanh %183 : vector<8x128xf32>
    %185 = arith.mulf %184, %10 : vector<8x128xf32>
    %186 = arith.addf %185, %14 : vector<8x128xf32>
    %187 = vector.extract_strided_slice %186 {offsets = [0, 0], sizes = [8, 32], strides = [1, 1]} : vector<8x128xf32> to vector<8x32xf32>
    %188 = vector.extract_strided_slice %186 {offsets = [0, 32], sizes = [8, 32], strides = [1, 1]} : vector<8x128xf32> to vector<8x32xf32>
    %189 = vector.extract_strided_slice %186 {offsets = [0, 64], sizes = [8, 32], strides = [1, 1]} : vector<8x128xf32> to vector<8x32xf32>
    %190 = vector.extract_strided_slice %186 {offsets = [0, 96], sizes = [8, 32], strides = [1, 1]} : vector<8x128xf32> to vector<8x32xf32>
    %191 = arith.mulf %188, %162 : vector<8x32xf32>
    %192 = arith.mulf %187, %189 : vector<8x32xf32>
    %193 = arith.addf %191, %192 : vector<8x32xf32>
    %194 = math.tanh %193 : vector<8x32xf32>
    %195 = arith.mulf %190, %194 : vector<8x32xf32>
    %196 = vector.extract_strided_slice %46 {offsets = [40, 0], sizes = [8, 128], strides = [1, 1]} : vector<64x128xf32> to vector<8x128xf32>
    %197 = arith.addf %196, %181 : vector<8x128xf32>
    %198 = math.tanh %197 : vector<8x128xf32>
    %199 = arith.mulf %198, %10 : vector<8x128xf32>
    %200 = arith.addf %199, %14 : vector<8x128xf32>
    %201 = vector.extract_strided_slice %200 {offsets = [0, 0], sizes = [8, 32], strides = [1, 1]} : vector<8x128xf32> to vector<8x32xf32>
    %202 = vector.extract_strided_slice %200 {offsets = [0, 32], sizes = [8, 32], strides = [1, 1]} : vector<8x128xf32> to vector<8x32xf32>
    %203 = vector.extract_strided_slice %200 {offsets = [0, 64], sizes = [8, 32], strides = [1, 1]} : vector<8x128xf32> to vector<8x32xf32>
    %204 = vector.extract_strided_slice %200 {offsets = [0, 96], sizes = [8, 32], strides = [1, 1]} : vector<8x128xf32> to vector<8x32xf32>
    %205 = arith.mulf %202, %176 : vector<8x32xf32>
    %206 = arith.mulf %201, %203 : vector<8x32xf32>
    %207 = arith.addf %205, %206 : vector<8x32xf32>
    %208 = math.tanh %207 : vector<8x32xf32>
    %209 = arith.mulf %204, %208 : vector<8x32xf32>
    %210 = tpu.concatenate %209, %195 in 1 : vector<8x32xf32>, vector<8x32xf32> -> vector<8x64xf32>
    %cst_22 = arith.constant dense<0.000000e+00> : vector<8x256xf32>
    %211 = tpu.matmul %210, %32, %cst_22 {dimension_numbers = #tpu.dot_dimension_numbers<[1], [0], [0], [1], [0, 0, 1, 1], [], []>} : vector<8x64xf32>, vector<64x256xf32>, vector<8x256xf32> -> vector<8x256xf32>
    %212 = vector.extract_strided_slice %211 {offsets = [0, 128], sizes = [8, 128], strides = [1, 1]} : vector<8x256xf32> to vector<8x128xf32>
    %213 = vector.extract_strided_slice %211 {offsets = [0, 0], sizes = [8, 128], strides = [1, 1]} : vector<8x256xf32> to vector<8x128xf32>
    %214 = arith.addf %213, %38 : vector<8x128xf32>
    %215 = math.tanh %214 : vector<8x128xf32>
    %216 = arith.mulf %215, %10 : vector<8x128xf32>
    %217 = arith.addf %216, %14 : vector<8x128xf32>
    %218 = vector.extract_strided_slice %217 {offsets = [0, 0], sizes = [8, 32], strides = [1, 1]} : vector<8x128xf32> to vector<8x32xf32>
    %219 = vector.extract_strided_slice %217 {offsets = [0, 32], sizes = [8, 32], strides = [1, 1]} : vector<8x128xf32> to vector<8x32xf32>
    %220 = vector.extract_strided_slice %217 {offsets = [0, 64], sizes = [8, 32], strides = [1, 1]} : vector<8x128xf32> to vector<8x32xf32>
    %221 = vector.extract_strided_slice %217 {offsets = [0, 96], sizes = [8, 32], strides = [1, 1]} : vector<8x128xf32> to vector<8x32xf32>
    %222 = arith.mulf %219, %193 : vector<8x32xf32>
    %223 = arith.mulf %218, %220 : vector<8x32xf32>
    %224 = arith.addf %222, %223 : vector<8x32xf32>
    %225 = math.tanh %224 : vector<8x32xf32>
    %226 = arith.mulf %221, %225 : vector<8x32xf32>
    %227 = vector.extract_strided_slice %46 {offsets = [48, 0], sizes = [8, 128], strides = [1, 1]} : vector<64x128xf32> to vector<8x128xf32>
    %228 = arith.addf %227, %212 : vector<8x128xf32>
    %229 = math.tanh %228 : vector<8x128xf32>
    %230 = arith.mulf %229, %10 : vector<8x128xf32>
    %231 = arith.addf %230, %14 : vector<8x128xf32>
    %232 = vector.extract_strided_slice %231 {offsets = [0, 0], sizes = [8, 32], strides = [1, 1]} : vector<8x128xf32> to vector<8x32xf32>
    %233 = vector.extract_strided_slice %231 {offsets = [0, 32], sizes = [8, 32], strides = [1, 1]} : vector<8x128xf32> to vector<8x32xf32>
    %234 = vector.extract_strided_slice %231 {offsets = [0, 64], sizes = [8, 32], strides = [1, 1]} : vector<8x128xf32> to vector<8x32xf32>
    %235 = vector.extract_strided_slice %231 {offsets = [0, 96], sizes = [8, 32], strides = [1, 1]} : vector<8x128xf32> to vector<8x32xf32>
    %236 = arith.mulf %233, %207 : vector<8x32xf32>
    %237 = arith.mulf %232, %234 : vector<8x32xf32>
    %238 = arith.addf %236, %237 : vector<8x32xf32>
    %239 = math.tanh %238 : vector<8x32xf32>
    %240 = arith.mulf %235, %239 : vector<8x32xf32>
    %241 = tpu.concatenate %240, %226 in 1 : vector<8x32xf32>, vector<8x32xf32> -> vector<8x64xf32>
    %cst_23 = arith.constant dense<0.000000e+00> : vector<8x256xf32>
    %242 = tpu.matmul %241, %32, %cst_23 {dimension_numbers = #tpu.dot_dimension_numbers<[1], [0], [0], [1], [0, 0, 1, 1], [], []>} : vector<8x64xf32>, vector<64x256xf32>, vector<8x256xf32> -> vector<8x256xf32>
    %243 = vector.extract_strided_slice %242 {offsets = [0, 128], sizes = [8, 128], strides = [1, 1]} : vector<8x256xf32> to vector<8x128xf32>
    %244 = vector.extract_strided_slice %242 {offsets = [0, 0], sizes = [8, 128], strides = [1, 1]} : vector<8x256xf32> to vector<8x128xf32>
    %245 = arith.addf %244, %38 : vector<8x128xf32>
    %246 = math.tanh %245 : vector<8x128xf32>
    %247 = arith.mulf %246, %10 : vector<8x128xf32>
    %248 = arith.addf %247, %14 : vector<8x128xf32>
    %249 = vector.extract_strided_slice %248 {offsets = [0, 0], sizes = [8, 32], strides = [1, 1]} : vector<8x128xf32> to vector<8x32xf32>
    %250 = vector.extract_strided_slice %248 {offsets = [0, 32], sizes = [8, 32], strides = [1, 1]} : vector<8x128xf32> to vector<8x32xf32>
    %251 = vector.extract_strided_slice %248 {offsets = [0, 64], sizes = [8, 32], strides = [1, 1]} : vector<8x128xf32> to vector<8x32xf32>
    %252 = vector.extract_strided_slice %248 {offsets = [0, 96], sizes = [8, 32], strides = [1, 1]} : vector<8x128xf32> to vector<8x32xf32>
    %253 = arith.mulf %250, %224 : vector<8x32xf32>
    %254 = arith.mulf %249, %251 : vector<8x32xf32>
    %255 = arith.addf %253, %254 : vector<8x32xf32>
    %256 = math.tanh %255 : vector<8x32xf32>
    %257 = arith.mulf %252, %256 : vector<8x32xf32>
    %258 = vector.extract_strided_slice %46 {offsets = [56, 0], sizes = [8, 128], strides = [1, 1]} : vector<64x128xf32> to vector<8x128xf32>
    %259 = arith.addf %258, %243 : vector<8x128xf32>
    %260 = math.tanh %259 : vector<8x128xf32>
    %261 = arith.mulf %260, %10 : vector<8x128xf32>
    %262 = arith.addf %261, %14 : vector<8x128xf32>
    %263 = vector.extract_strided_slice %262 {offsets = [0, 0], sizes = [8, 32], strides = [1, 1]} : vector<8x128xf32> to vector<8x32xf32>
    %264 = vector.extract_strided_slice %262 {offsets = [0, 32], sizes = [8, 32], strides = [1, 1]} : vector<8x128xf32> to vector<8x32xf32>
    %265 = vector.extract_strided_slice %262 {offsets = [0, 64], sizes = [8, 32], strides = [1, 1]} : vector<8x128xf32> to vector<8x32xf32>
    %266 = vector.extract_strided_slice %262 {offsets = [0, 96], sizes = [8, 32], strides = [1, 1]} : vector<8x128xf32> to vector<8x32xf32>
    %267 = arith.mulf %264, %238 : vector<8x32xf32>
    %268 = arith.mulf %263, %265 : vector<8x32xf32>
    %269 = arith.addf %267, %268 : vector<8x32xf32>
    %270 = math.tanh %269 : vector<8x32xf32>
    %271 = arith.mulf %266, %270 : vector<8x32xf32>
    %272 = tpu.concatenate %271, %257 in 1 : vector<8x32xf32>, vector<8x32xf32> -> vector<8x64xf32>
    %cst_24 = arith.constant dense<0.000000e+00> : vector<8x256xf32>
    %273 = tpu.matmul %272, %32, %cst_24 {dimension_numbers = #tpu.dot_dimension_numbers<[1], [0], [0], [1], [0, 0, 1, 1], [], []>} : vector<8x64xf32>, vector<64x256xf32>, vector<8x256xf32> -> vector<8x256xf32>
    %274 = vector.extract_strided_slice %273 {offsets = [0, 0], sizes = [8, 128], strides = [1, 1]} : vector<8x256xf32> to vector<8x128xf32>
    %275 = arith.addf %274, %38 : vector<8x128xf32>
    %276 = math.tanh %275 : vector<8x128xf32>
    %277 = arith.mulf %276, %10 : vector<8x128xf32>
    %278 = arith.addf %277, %14 : vector<8x128xf32>
    %279 = vector.extract_strided_slice %278 {offsets = [0, 0], sizes = [8, 32], strides = [1, 1]} : vector<8x128xf32> to vector<8x32xf32>
    %280 = vector.extract_strided_slice %278 {offsets = [0, 32], sizes = [8, 32], strides = [1, 1]} : vector<8x128xf32> to vector<8x32xf32>
    %281 = vector.extract_strided_slice %278 {offsets = [0, 64], sizes = [8, 32], strides = [1, 1]} : vector<8x128xf32> to vector<8x32xf32>
    %282 = vector.extract_strided_slice %278 {offsets = [0, 96], sizes = [8, 32], strides = [1, 1]} : vector<8x128xf32> to vector<8x32xf32>
    %283 = arith.mulf %280, %255 : vector<8x32xf32>
    %284 = arith.mulf %279, %281 : vector<8x32xf32>
    %285 = arith.addf %283, %284 : vector<8x32xf32>
    %286 = math.tanh %285 : vector<8x32xf32>
    %287 = arith.mulf %282, %286 : vector<8x32xf32>
    %288 = vector.broadcast %39 : vector<1x32xf32> to vector<8x32xf32>
    %289 = arith.mulf %287, %288 : vector<8x32xf32>
    %cst_25 = arith.constant dense<0.000000e+00> : vector<8xf32>
    %290 = vector.multi_reduction <add>, %289, %cst_25 [1] : vector<8x32xf32> to vector<8xf32>
    %291 = vector.shape_cast %290 : vector<8xf32> to vector<8x1xf32>
    %292 = vector.broadcast %40 : vector<1x1xf32> to vector<8x1xf32>
    %293 = arith.addf %291, %292 : vector<8x1xf32>
    %c0_26 = arith.constant 0 : index
    %c0_27 = arith.constant 0 : index
    %294 = vector.load %arg3[%c0_26, %c0_27] : memref<8x1xf32, #tpu.memory_space<vmem>>, vector<8x1xf32>
    tpu.vector_store %arg3[%c0_26, %c0_27], %293 {strides = array<i32>} : memref<8x1xf32, #tpu.memory_space<vmem>>, vector<8x1xf32>,
    return
  }
}

</mosaic_0001>

<bundles_post_ra>
// kernel: lstm_model_forward.1
= control target key start
LH: loop header
LB: loop body
LE: loop exit
PB: predicated region body
PF: predicated region fallthrough
CT: control target
= control target key end

     0   :  { %vm108_vm0 = vcmask 1045504   ;;  %vm83_vm1 = vcmask 48128   ;;  %v14_v2 = vlaneseq  ;;  %v1002_v5 = vmov 0.5   ;;  %s1003_s18 = smov 64   ;;  %s1004_s19 = smov 32   ;;  %s1448_s2 = inlined_call_operand.vmem [shape: f32[10,128], index: 2, kind: input, shape index: {}]   ;;  %s1449_s0 = inlined_call_operand.vmem [shape: f32[64,6], index: 0, kind: input, shape index: {}]   ;;  %s1450_s1 = inlined_call_operand.vmem [shape: f32[64,256], index: 1, kind: input, shape index: {}]   ;;  %s1451_s3 = inlined_call_operand.vmem [shape: f32[8,1], index: 3, kind: output, shape index: {}]  }
   0x1   :  { %v67_v0 = vld [vmem:[%s1448_s2] sm:$0x3f]  ;;  %v1036_v4 = vld [vmem:[%s1448_s2 + $0x6] ss:$0 sm:$0xff]  ;;  %s1005_s20 = smov 96   ;;  %v47_v17 = vld [vmem:[%s1450_s1 + $0x70] sm:$0xff] }
   0x2   :  { %907 = vmatpush.msk.msra.mxu0 %vm108_vm0, %v67_v0  ;;  %v74_v1 = vld [vmem:[%s1449_s0] sm:$0xff]  ;;  %v15_v3 = vand.u32 127, %v14_v2  ;;  %v43_v22 = vld [vmem:[%s1450_s1 + $0x50] sm:$0xff]  ;;  %v48_v23 = vld [vmem:[%s1450_s1 + $0x78] sm:$0xff]  ;;  %vm179_vm8 = vcmask 261120   ;;  %vm181_vm9 = vcmask 523264  }
   0x3   :  { %908 = vmatmul.msk.f32.vlgmr.msra.gmra.mxu0 %vm83_vm1, %v74_v1  ;;  %v45_v19 = vld [vmem:[%s1450_s1 + $0x60] sm:$0xff]  ;;  %v46_v24 = vld [vmem:[%s1450_s1 + $0x68] sm:$0xff]  ;;  %v44_v28 = vld [vmem:[%s1450_s1 + $0x58] sm:$0xff]  ;;  %vm901_vm10 = vcmask 7168  }
   0x4   :  { %vm16_vm2 = vcmp.ge.s32.totalorder %v15_v3, 64  ;;  %vm17_vm3 = vcmp.lt.s32.totalorder %v15_v3, 96  ;;  %v21_v18 = vadd.s32 128, %v15_v3  ;;  %v41_v25 = vld [vmem:[%s1450_s1 + $0x40] sm:$0xff]  ;;  %v39_v29 = vld [vmem:[%s1450_s1 + $0x30] sm:$0xff]  ;;  %v42_v33 = vld [vmem:[%s1450_s1 + $0x48] sm:$0xff] }
   0x5   :  { %vm18_vm4 = vmand %vm16_vm2, %vm17_vm3  ;;  %v37_v34 = vld [vmem:[%s1450_s1 + $0x20] sm:$0xff]  ;;  %v40_v37 = vld [vmem:[%s1450_s1 + $0x38] sm:$0xff] }
   0x6   :  { %v1038_v6 = vsel %vm18_vm4, 1.0, %v1002_v5  ;;  %vm26_vm5 = vcmp.ge.s32.totalorder %v21_v18, 192  ;;  %vm28_vm6 = vcmp.lt.s32.totalorder %v21_v18, 224  ;;  %v35_v38 = vld [vmem:[%s1450_s1 + $0x10] sm:$0xff]  ;;  %v38_v41 = vld [vmem:[%s1450_s1 + $0x28] sm:$0xff]  ;;  %v36_v44 = vld [vmem:[%s1450_s1 + $0x18] sm:$0xff] }
   0x7   :  { %v1043_v10 = vsub.f32 1.0, %v1038_v6  ;;  %v1061_v20 = vmul.f32 %v47_v17, %v1038_v6  ;;  %v1064_v21 = vmul.f32 %v45_v19, %v1038_v6  ;;  %vm30_vm7 = vmand %vm26_vm5, %vm28_vm6  ;;  %v1080_v26 = vmul.f32 %v43_v22, %v1038_v6  ;;  %v33_v49 = vld [vmem:[%s1450_s1] sm:$0xff]  ;;  %v34_v50 = vld [vmem:[%s1450_s1 + $0x8] sm:$0xff] }
   0x8   :  { %v50_v27 = vsel %vm30_vm7, 1.0, %v1002_v5  ;;  %v1096_v32 = vmul.f32 %v41_v25, %v1038_v6  ;;  %v1110_v36 = vmul.f32 %v39_v29, %v1038_v6  ;;  %v1125_v40 = vmul.f32 %v37_v34, %v1038_v6  ;;  %v75_v53 = vld [vmem:[%s1449_s0 + $0x8] sm:$0xff]  ;;  %v69_v56 = vld [vmem:[%s1448_s2 + $0x7] sm:$0x1]  ;;  %v76_v25 = vld [vmem:[%s1449_s0 + $0x10] sm:$0xff] }
   0x9   :  { %193 = vmatpush.msra.mxu1 %v1061_v20  ;;  %285 = vmatpush.msra.mxu3 %v1061_v20  ;;  %v1090_v30 = vmul.f32 %v50_v27, %v48_v23  ;;  %v1093_v31 = vmul.f32 %v50_v27, %v46_v24  ;;  %v1107_v35 = vmul.f32 %v50_v27, %v44_v28 }
   0xa   :  { %759 = vmatpush.msrb.mxu0 %v1061_v20  ;;  %v1122_v39 = vmul.f32 %v50_v27, %v42_v33  ;;  %v1134_v42 = vmul.f32 %v50_v27, %v40_v37  ;;  %v1137_v43 = vmul.f32 %v35_v38, %v1038_v6  ;;  %v1146_v45 = vmul.f32 %v50_v27, %v38_v41 }
   0xb   :  { %194 = vmatpush.msra.mxu1 %v1064_v21  ;;  %286 = vmatpush.msra.mxu3 %v1064_v21  ;;  %v1152_v46 = vmul.f32 %v50_v27, %v36_v44  ;;  %v1168_v51 = vmul.f32 %v33_v49, %v1038_v6  ;;  %v1170_v52 = vmul.f32 %v50_v27, %v34_v50 }
   0xc   :  { %213 = vmatpush.msra.mxu2 %v1090_v30  ;;  %760 = vmatpush.msrb.mxu0 %v1064_v21  ;;  %v70_v57 = vmul.f32 %v69_v56, %v1038_v6 }
   0xd   :  { %195 = vmatpush.msra.mxu1 %v1080_v26  ;;  %287 = vmatpush.msra.mxu3 %v1080_v26 }
   0xe   :  { %214 = vmatpush.msra.mxu2 %v1093_v31  ;;  %761 = vmatpush.msrb.mxu0 %v1080_v26  ;;  %v1227_v59 = vperm.slane %v70_v57, 0 }
   0xf   :  { %196 = vmatpush.msra.mxu1 %v1096_v32  ;;  %288 = vmatpush.msra.mxu3 %v1096_v32 }
  0x10   :  { %215 = vmatpush.msra.mxu2 %v1107_v35  ;;  %762 = vmatpush.msrb.mxu0 %v1096_v32 }
  0x11   :  { %197 = vmatpush.msra.mxu1 %v1110_v36  ;;  %289 = vmatpush.msra.mxu3 %v1110_v36 }
  0x12   :  { %216 = vmatpush.msra.mxu2 %v1122_v39  ;;  %763 = vmatpush.msrb.mxu0 %v1110_v36 }
  0x13   :  { %198 = vmatpush.msra.mxu1 %v1125_v40  ;;  %290 = vmatpush.msra.mxu3 %v1125_v40 }
  0x14   :  { %217 = vmatpush.msra.mxu2 %v1134_v42  ;;  %764 = vmatpush.msrb.mxu0 %v1125_v40 }
  0x15   :  { %199 = vmatpush.msra.mxu1 %v1137_v43  ;;  %291 = vmatpush.msra.mxu3 %v1137_v43 }
  0x16   :  { %218 = vmatpush.msra.mxu2 %v1146_v45  ;;  %765 = vmatpush.msrb.mxu0 %v1137_v43 }
  0x17   :  { %200 = vmatpush.msra.mxu1 %v1168_v51  ;;  %292 = vmatpush.msra.mxu3 %v1168_v51 }
  0x18   :  { %219 = vmatpush.msra.mxu2 %v1152_v46  ;;  %909 = vmatmul.msk.f32.gmra.mxu0 %vm83_vm1, %v75_v53 }
  0x19   :  { %305 = vmatpush.msrb.mxu1 %v1090_v30  ;;  %403 = vmatpush.msrb.mxu3 %v1090_v30 }
  0x1a   :  { %220 = vmatpush.msra.mxu2 %v1170_v52  ;;  %766 = vmatpush.msrb.mxu0 %v1168_v51 }
  0x1b   :  { %306 = vmatpush.msrb.mxu1 %v1093_v31  ;;  %404 = vmatpush.msrb.mxu3 %v1093_v31 }
  0x1c   :  { %383 = vmatpush.msrb.mxu2 %v1061_v20 }
  0x1d   :  { %307 = vmatpush.msrb.mxu1 %v1107_v35  ;;  %405 = vmatpush.msrb.mxu3 %v1107_v35 }
  0x1e   :  { %384 = vmatpush.msrb.mxu2 %v1064_v21 }
  0x1f   :  { %308 = vmatpush.msrb.mxu1 %v1122_v39  ;;  %406 = vmatpush.msrb.mxu3 %v1122_v39 }
  0x20   :  { %385 = vmatpush.msrb.mxu2 %v1080_v26  ;;  %910 = vmatmul.msk.f32.gmra.mxu0 %vm83_vm1, %v76_v25 }
  0x21   :  { %309 = vmatpush.msrb.mxu1 %v1134_v42  ;;  %407 = vmatpush.msrb.mxu3 %v1134_v42 }
  0x22   :  { %386 = vmatpush.msrb.mxu2 %v1096_v32 }
  0x23   :  { %310 = vmatpush.msrb.mxu1 %v1146_v45  ;;  %408 = vmatpush.msrb.mxu3 %v1146_v45 }
  0x24   :  { %387 = vmatpush.msrb.mxu2 %v1110_v36 }
  0x25   :  { %311 = vmatpush.msrb.mxu1 %v1152_v46  ;;  %409 = vmatpush.msrb.mxu3 %v1152_v46 }
  0x26   :  { %388 = vmatpush.msrb.mxu2 %v1125_v40 }
  0x27   :  { %312 = vmatpush.msrb.mxu1 %v1170_v52  ;;  %410 = vmatpush.msrb.mxu3 %v1170_v52 }
  0x28   :  { %389 = vmatpush.msrb.mxu2 %v1137_v43 }
  0x2a   :  { %390 = vmatpush.msrb.mxu2 %v1168_v51 }
  0x80   :  { %v129_v7 = vpop.f32.mrf.mxu0 }
  0x81   :  { %v130_v8 = vadd.f32 %v1036_v4, %v129_v7 }
  0x83   :  { %v153_v9 = vmul.f32 %v130_v8, %v1038_v6 }
  0x85   :  { %938 = vtanh.f32 %v153_v9 }
  0x8b   :  { %v939_v11 = vpop.eup %938 }
  0x8c   :  { %v162_v12 = vmul.f32 %v939_v11, %v1038_v6 }
  0x8e   :  { %v1047_v13 = vadd.f32 %v162_v12, %v1043_v10 }
  0x90   :  { %165 = vrot.lane.b32.xlu0 %v1047_v13, %s1003_s18 }
  0x95   :  { %v132_v58 = vpop.f32.mrf.mxu0 }
  0x96   :  { %v133_v60 = vadd.f32 %v1036_v4, %v132_v58 }
  0x98   :  { %v154_v63 = vmul.f32 %v133_v60, %v1038_v6 }
  0x9d   :  { %v135_v37 = vpop.f32.mrf.mxu0 }
  0x9e   :  { %v136_v38 = vadd.f32 %v1036_v4, %v135_v37 }
  0xa0   :  { %v155_v41 = vmul.f32 %v136_v38, %v1038_v6 }
 0x102   :  { %v166_v14 = vpop.permute.xlu0 %165 }
 0x103   :  { %v168_v15 = vmul.f32 %v166_v14, %v1047_v13 }
 0x105   :  { %940 = vtanh.f32 %v168_v15  ;;  %245 = vrot.lane.b32.xlu2 %v168_v15, %s1004_s19 }
 0x10b   :  { %v941_v16 = vpop.eup %940 }
 0x10c   :  { %171 = vrot.lane.b32.xlu0 %v941_v16, %s1005_s20 }
 0x15f   :  { %v246_v11 = vpop.permute.xlu2 %245 }
 0x17e   :  { %v172_v47 = vpop.permute.xlu0 %171 }
 0x17f   :  { %v174_v48 = vmul.f32 %v172_v47, %v1047_v13 }
 0x181   :  { %176 = vrot.lane.b32.xlu1 %v174_v48, %s1004_s19 }
 0x1f3   :  { %v177_v54 = vpop.permute.xlu1 %176 }
 0x1f4   :  { %v180_v55 = vsel %vm179_vm8, %v177_v54, 0.0 }
 0x1f5   :  { %916 = vmatmul.msk.f32.vlgmr.msra.gmra.mxu1 %vm181_vm9, %v180_v55  ;;  %917 = vmatmul.msk.f32.vlgmr.msra.gmra.mxu2 %vm181_vm9, %v180_v55 }
 0x1f6   :  { %477 = vmatpush.msra.mxu1 %v1061_v20  ;;  %497 = vmatpush.msra.mxu2 %v1090_v30 }
 0x1f8   :  { %478 = vmatpush.msra.mxu1 %v1064_v21  ;;  %498 = vmatpush.msra.mxu2 %v1093_v31 }
 0x1fa   :  { %479 = vmatpush.msra.mxu1 %v1080_v26  ;;  %499 = vmatpush.msra.mxu2 %v1107_v35 }
 0x1fc   :  { %480 = vmatpush.msra.mxu1 %v1096_v32  ;;  %500 = vmatpush.msra.mxu2 %v1122_v39 }
 0x1fe   :  { %481 = vmatpush.msra.mxu1 %v1110_v36  ;;  %501 = vmatpush.msra.mxu2 %v1134_v42 }
 0x200   :  { %482 = vmatpush.msra.mxu1 %v1125_v40  ;;  %502 = vmatpush.msra.mxu2 %v1146_v45 }
 0x202   :  { %483 = vmatpush.msra.mxu1 %v1137_v43  ;;  %503 = vmatpush.msra.mxu2 %v1152_v46 }
 0x204   :  { %484 = vmatpush.msra.mxu1 %v1168_v51  ;;  %504 = vmatpush.msra.mxu2 %v1170_v52 }
 0x272   :  { %v202_v61 = vpop.f32.mrf.mxu1 }
 0x273   :  { %v225_v62 = vadd.f32 %v202_v61, %v1227_v59 }
 0x275   :  { %942 = vtanh.f32 %v225_v62 }
 0x278   :  { %v222_v0 = vpop.f32.mrf.mxu2 }
 0x279   :  { %v240_v1 = vadd.f32 %v222_v0, %v154_v63 }
 0x27b   :  { %v943_v2 = vpop.eup %942  ;;  %944 = vtanh.f32 %v240_v1 }
 0x27c   :  { %v227_v3 = vmul.f32 %v943_v2, %v1038_v6 }
 0x27e   :  { %v228_v5 = vadd.f32 %v227_v3, %v1043_v10 }
 0x280   :  { %230 = vrot.lane.b32.xlu2 %v228_v5, %s1003_s18 }
 0x281   :  { %v945_v7 = vpop.eup %944 }
 0x282   :  { %v242_v8 = vmul.f32 %v945_v7, %v1038_v6 }
 0x284   :  { %v243_v9 = vadd.f32 %v242_v8, %v1043_v10 }
 0x286   :  { %250 = vrot.lane.b32.xlu1 %v243_v9, %s1003_s18  ;;  %v248_v19 = vmul.f32 %v246_v11, %v243_v9 }
 0x2da   :  { %v231_v12 = vpop.permute.xlu2 %230 }
 0x2db   :  { %v233_v13 = vmul.f32 %v231_v12, %v228_v5 }
 0x2dd   :  { %946 = vtanh.f32 %v233_v13 }
 0x2e3   :  { %v947_v14 = vpop.eup %946 }
 0x2e4   :  { %236 = vrot.lane.b32.xlu1 %v947_v14, %s1005_s20 }
 0x2f8   :  { %v251_v15 = vpop.permute.xlu1 %250 }
 0x2f9   :  { %v253_v16 = vmul.f32 %v251_v15, %v243_v9  ;;  %v77_v15 = vld [vmem:[%s1449_s0 + $0x18] sm:$0xff] }
 0x2fa   :  { %911 = vmatmul.msk.f32.gmra.mxu0 %vm83_vm1, %v77_v15 }
 0x2fb   :  { %255 = vrot.lane.b32.xlu0 %v253_v16, %s1004_s19 }
 0x356   :  { %v237_v17 = vpop.permute.xlu1 %236 }
 0x357   :  { %v239_v18 = vmul.f32 %v237_v17, %v228_v5 }
 0x359   :  { %270 = vrot.lane.b32.xlu1 %v239_v18, %s1003_s18 }
 0x361   :  { %322 = vrot.lane.b32.xlu1 %v233_v13, %s1004_s19 }
 0x36d   :  { %v256_v22 = vpop.permute.xlu0 %255 }
 0x36e   :  { %v258_v23 = vadd.f32 %v256_v22, %v248_v19 }
 0x370   :  { %948 = vtanh.f32 %v258_v23 }
 0x376   :  { %v949_v24 = vpop.eup %948 }
 0x377   :  { %261 = vrot.lane.b32.xlu2 %v949_v24, %s1003_s18  ;;  %v138_v19 = vpop.f32.mrf.mxu0 }
 0x378   :  { %v139_v22 = vadd.f32 %v1036_v4, %v138_v19 }
 0x3cb   :  { %v271_v29 = vpop.permute.xlu1 %270 }
 0x3d1   :  { %v262_v27 = vpop.permute.xlu2 %261 }
 0x3d2   :  { %v264_v28 = vmul.f32 %v262_v27, %v243_v9 }
 0x3d3   :  { %v323_v63 = vpop.permute.xlu1 %322 }
 0x3d4   :  { %266 = vrot.lane.b32.xlu0 %v264_v28, %s1004_s19 }
 0x446   :  { %v267_v33 = vpop.permute.xlu0 %266 }
 0x447   :  { %v273_v34 = vsel %vm179_vm8, %v267_v33, %v271_v29 }
 0x448   :  { %918 = vmatmul.msk.f32.vlgmr.msra.gmra.mxu3 %vm181_vm9, %v273_v34  ;;  %919 = vmatmul.msk.f32.vlgmr.msrb.gmra.mxu1 %vm181_vm9, %v273_v34 }
 0x449   :  { %571 = vmatpush.msra.mxu3 %v1061_v20  ;;  %591 = vmatpush.msrb.mxu1 %v1090_v30 }
 0x44b   :  { %572 = vmatpush.msra.mxu3 %v1064_v21  ;;  %592 = vmatpush.msrb.mxu1 %v1093_v31 }
 0x44d   :  { %573 = vmatpush.msra.mxu3 %v1080_v26  ;;  %593 = vmatpush.msrb.mxu1 %v1107_v35 }
 0x44f   :  { %574 = vmatpush.msra.mxu3 %v1096_v32  ;;  %594 = vmatpush.msrb.mxu1 %v1122_v39 }
 0x451   :  { %575 = vmatpush.msra.mxu3 %v1110_v36  ;;  %595 = vmatpush.msrb.mxu1 %v1134_v42 }
 0x453   :  { %576 = vmatpush.msra.mxu3 %v1125_v40  ;;  %596 = vmatpush.msrb.mxu1 %v1146_v45 }
 0x455   :  { %577 = vmatpush.msra.mxu3 %v1137_v43  ;;  %597 = vmatpush.msrb.mxu1 %v1152_v46 }
 0x457   :  { %578 = vmatpush.msra.mxu3 %v1168_v51  ;;  %598 = vmatpush.msrb.mxu1 %v1170_v52 }
 0x4c5   :  { %v314_v44 = vpop.f32.mrf.mxu1 }
 0x4c6   :  { %v342_v47 = vadd.f32 %v314_v44, %v155_v41 }
 0x4c8   :  { %950 = vtanh.f32 %v342_v47 }
 0x4cb   :  { %v294_v48 = vpop.f32.mrf.mxu3 }
 0x4cc   :  { %v317_v49 = vadd.f32 %v294_v48, %v1227_v59 }
 0x4ce   :  { %v951_v50 = vpop.eup %950  ;;  %952 = vtanh.f32 %v317_v49 }
 0x4cf   :  { %v344_v53 = vmul.f32 %v951_v50, %v1038_v6 }
 0x4d1   :  { %v345_v54 = vadd.f32 %v344_v53, %v1043_v10 }
 0x4d3   :  { %348 = vrot.lane.b32.xlu0 %v345_v54, %s1003_s18  ;;  %v346_v5 = vmul.f32 %v345_v54, %v258_v23  ;;  %v156_v23 = vmul.f32 %v139_v22, %v1038_v6 }
 0x4d4   :  { %v953_v55 = vpop.eup %952 }
 0x4d5   :  { %v319_v56 = vmul.f32 %v953_v55, %v1038_v6 }
 0x4d7   :  { %v320_v57 = vadd.f32 %v319_v56, %v1043_v10 }
 0x4d9   :  { %327 = vrot.lane.b32.xlu2 %v320_v57, %s1003_s18  ;;  %v325_v0 = vmul.f32 %v323_v63, %v320_v57 }
 0x533   :  { %v328_v58 = vpop.permute.xlu2 %327 }
 0x534   :  { %v330_v60 = vmul.f32 %v328_v58, %v320_v57 }
 0x536   :  { %332 = vrot.lane.b32.xlu2 %v330_v60, %s1004_s19 }
 0x545   :  { %v349_v61 = vpop.permute.xlu0 %348 }
 0x546   :  { %v351_v62 = vmul.f32 %v349_v61, %v345_v54 }
 0x548   :  { %353 = vrot.lane.b32.xlu0 %v351_v62, %s1004_s19 }
 0x590   :  { %v333_v1 = vpop.permute.xlu2 %332 }
 0x591   :  { %v335_v2 = vadd.f32 %v333_v1, %v325_v0  ;;  %v78_v1 = vld [vmem:[%s1449_s0 + $0x20] sm:$0xff] }
 0x592   :  { %912 = vmatmul.msk.f32.gmra.mxu0 %vm83_vm1, %v78_v1 }
 0x593   :  { %954 = vtanh.f32 %v335_v2 }
 0x599   :  { %v955_v3 = vpop.eup %954 }
 0x59a   :  { %338 = vrot.lane.b32.xlu1 %v955_v3, %s1003_s18 }
 0x5ba   :  { %v354_v7 = vpop.permute.xlu0 %353 }
 0x5bb   :  { %v356_v8 = vadd.f32 %v354_v7, %v346_v5 }
 0x5bd   :  { %956 = vtanh.f32 %v356_v8 }
 0x5c3   :  { %v957_v9 = vpop.eup %956 }
 0x5c4   :  { %359 = vrot.lane.b32.xlu2 %v957_v9, %s1003_s18 }
 0x60c   :  { %v339_v11 = vpop.permute.xlu1 %338 }
 0x60d   :  { %v341_v12 = vmul.f32 %v339_v11, %v320_v57 }
 0x60f   :  { %368 = vrot.lane.b32.xlu1 %v341_v12, %s1003_s18 }
 0x61e   :  { %v360_v13 = vpop.permute.xlu2 %359 }
 0x61f   :  { %v362_v14 = vmul.f32 %v360_v13, %v345_v54 }
 0x621   :  { %364 = vrot.lane.b32.xlu0 %v362_v14, %s1004_s19 }
 0x681   :  { %v369_v16 = vpop.permute.xlu1 %368 }
 0x693   :  { %v365_v17 = vpop.permute.xlu0 %364 }
 0x694   :  { %v371_v18 = vsel %vm179_vm8, %v365_v17, %v369_v16 }
 0x695   :  { %920 = vmatmul.msk.f32.vlgmr.msrb.gmra.mxu2 %vm181_vm9, %v371_v18  ;;  %921 = vmatmul.msk.f32.vlgmr.msrb.gmra.mxu3 %vm181_vm9, %v371_v18 }
 0x696   :  { %665 = vmatpush.msrb.mxu2 %v1061_v20  ;;  %685 = vmatpush.msrb.mxu3 %v1090_v30 }
 0x698   :  { %666 = vmatpush.msrb.mxu2 %v1064_v21  ;;  %686 = vmatpush.msrb.mxu3 %v1093_v31 }
 0x69a   :  { %667 = vmatpush.msrb.mxu2 %v1080_v26  ;;  %687 = vmatpush.msrb.mxu3 %v1107_v35 }
 0x69c   :  { %668 = vmatpush.msrb.mxu2 %v1096_v32  ;;  %688 = vmatpush.msrb.mxu3 %v1122_v39 }
 0x69e   :  { %669 = vmatpush.msrb.mxu2 %v1110_v36  ;;  %689 = vmatpush.msrb.mxu3 %v1134_v42 }
 0x6a0   :  { %670 = vmatpush.msrb.mxu2 %v1125_v40  ;;  %690 = vmatpush.msrb.mxu3 %v1146_v45 }
 0x6a2   :  { %671 = vmatpush.msrb.mxu2 %v1137_v43  ;;  %691 = vmatpush.msrb.mxu3 %v1152_v46 }
 0x6a4   :  { %672 = vmatpush.msrb.mxu2 %v1168_v51  ;;  %692 = vmatpush.msrb.mxu3 %v1170_v52 }
 0x718   :  { %v392_v24 = vpop.f32.mrf.mxu2  ;;  %v412_v25 = vpop.f32.mrf.mxu3 }
 0x719   :  { %v415_v27 = vadd.f32 %v392_v24, %v1227_v59  ;;  %v436_v28 = vadd.f32 %v412_v25, %v156_v23  ;;  %v79_v23 = vld [vmem:[%s1449_s0 + $0x28] sm:$0xff] }
 0x71a   :  { %913 = vmatmul.msk.f32.gmra.mxu0 %vm83_vm1, %v79_v23 }
 0x71b   :  { %958 = vtanh.f32 %v415_v27 }
 0x71c   :  { %960 = vtanh.f32 %v436_v28 }
 0x721   :  { %v959_v29 = vpop.eup %958 }
 0x722   :  { %v961_v33 = vpop.eup %960  ;;  %v417_v34 = vmul.f32 %v959_v29, %v1038_v6 }
 0x723   :  { %v438_v37 = vmul.f32 %v961_v33, %v1038_v6 }
 0x724   :  { %v418_v38 = vadd.f32 %v417_v34, %v1043_v10 }
 0x725   :  { %v439_v41 = vadd.f32 %v438_v37, %v1043_v10 }
 0x726   :  { %421 = vrot.lane.b32.xlu2 %v418_v38, %s1003_s18  ;;  %v419_v50 = vmul.f32 %v418_v38, %v335_v2 }
 0x727   :  { %442 = vrot.lane.b32.xlu0 %v439_v41, %s1003_s18  ;;  %v440_v54 = vmul.f32 %v439_v41, %v356_v8 }
 0x780   :  { %v422_v44 = vpop.permute.xlu2 %421 }
 0x781   :  { %v424_v47 = vmul.f32 %v422_v44, %v418_v38 }
 0x783   :  { %426 = vrot.lane.b32.xlu1 %v424_v47, %s1004_s19 }
 0x799   :  { %v443_v48 = vpop.permute.xlu0 %442 }
 0x79a   :  { %v445_v49 = vmul.f32 %v443_v48, %v439_v41 }
 0x79c   :  { %447 = vrot.lane.b32.xlu2 %v445_v49, %s1004_s19 }
 0x7f5   :  { %v427_v53 = vpop.permute.xlu1 %426 }
 0x7f6   :  { %v1316_v55 = vadd.f32 %v427_v53, %v419_v50  ;;  %v448_v56 = vpop.permute.xlu2 %447 }
 0x7f7   :  { %v450_v57 = vadd.f32 %v448_v56, %v440_v54 }
 0x7f8   :  { %962 = vtanh.f32 %v1316_v55 }
 0x7f9   :  { %964 = vtanh.f32 %v450_v57 }
 0x7fe   :  { %v963_v58 = vpop.eup %962 }
 0x7ff   :  { %v965_v60 = vpop.eup %964  ;;  %432 = vrot.lane.b32.xlu0 %v963_v58, %s1003_s18 }
 0x800   :  { %453 = vrot.lane.b32.xlu1 %v965_v60, %s1003_s18 }
 0x871   :  { %v433_v61 = vpop.permute.xlu0 %432 }
 0x872   :  { %v454_v62 = vpop.permute.xlu1 %453  ;;  %v435_v63 = vmul.f32 %v433_v61, %v418_v38 }
 0x873   :  { %v456_v0 = vmul.f32 %v454_v62, %v439_v41 }
 0x874   :  { %462 = vrot.lane.b32.xlu0 %v435_v63, %s1003_s18 }
 0x875   :  { %458 = vrot.lane.b32.xlu2 %v456_v0, %s1004_s19 }
 0x8cf   :  { %v459_v2 = vpop.permute.xlu2 %458 }
 0x8e6   :  { %v463_v3 = vpop.permute.xlu0 %462 }
 0x8e7   :  { %v465_v5 = vsel %vm179_vm8, %v459_v2, %v463_v3 }
 0x8e8   :  { %922 = vmatmul.msk.f32.vlgmr.msra.gmra.mxu1 %vm181_vm9, %v465_v5  ;;  %923 = vmatmul.msk.f32.vlgmr.msra.gmra.mxu2 %vm181_vm9, %v465_v5 }
 0x8e9   :  { %779 = vmatpush.msra.mxu1 %v1090_v30  ;;  %853 = vmatpush.msra.mxu2 %v1061_v20  ;;  %v141_v20 = vpop.f32.mrf.mxu0 }
 0x8eb   :  { %780 = vmatpush.msra.mxu1 %v1093_v31  ;;  %854 = vmatpush.msra.mxu2 %v1064_v21  ;;  %v142_v21 = vadd.f32 %v1036_v4, %v141_v20 }
 0x8ed   :  { %781 = vmatpush.msra.mxu1 %v1107_v35  ;;  %855 = vmatpush.msra.mxu2 %v1080_v26  ;;  %v157_v31 = vmul.f32 %v142_v21, %v1038_v6 }
 0x8ef   :  { %782 = vmatpush.msra.mxu1 %v1122_v39  ;;  %856 = vmatpush.msra.mxu2 %v1096_v32 }
 0x8f1   :  { %783 = vmatpush.msra.mxu1 %v1134_v42  ;;  %857 = vmatpush.msra.mxu2 %v1110_v36  ;;  %v144_v28 = vpop.f32.mrf.mxu0 }
 0x8f2   :  { %v145_v29 = vadd.f32 %v1036_v4, %v144_v28 }
 0x8f3   :  { %784 = vmatpush.msra.mxu1 %v1146_v45  ;;  %858 = vmatpush.msra.mxu2 %v1125_v40 }
 0x8f4   :  { %v158_v33 = vmul.f32 %v145_v29, %v1038_v6 }
 0x8f5   :  { %785 = vmatpush.msra.mxu1 %v1152_v46  ;;  %859 = vmatpush.msra.mxu2 %v1137_v43 }
 0x8f7   :  { %786 = vmatpush.msra.mxu1 %v1170_v52  ;;  %860 = vmatpush.msra.mxu2 %v1168_v51 }
 0x965   :  { %v486_v26 = vpop.f32.mrf.mxu1 }
 0x966   :  { %v509_v30 = vadd.f32 %v486_v26, %v1227_v59  ;;  %v80_v26 = vld [vmem:[%s1449_s0 + $0x30] sm:$0xff] }
 0x967   :  { %914 = vmatmul.msk.f32.gmra.mxu0 %vm83_vm1, %v80_v26 }
 0x968   :  { %966 = vtanh.f32 %v509_v30 }
 0x96b   :  { %v506_v32 = vpop.f32.mrf.mxu2 }
 0x96c   :  { %v530_v35 = vadd.f32 %v506_v32, %v157_v31 }
 0x96e   :  { %v967_v36 = vpop.eup %966  ;;  %968 = vtanh.f32 %v530_v35 }
 0x96f   :  { %v511_v39 = vmul.f32 %v967_v36, %v1038_v6 }
 0x971   :  { %v512_v40 = vadd.f32 %v511_v39, %v1043_v10 }
 0x973   :  { %515 = vrot.lane.b32.xlu1 %v512_v40, %s1003_s18  ;;  %v513_v13 = vmul.f32 %v512_v40, %v1316_v55 }
 0x974   :  { %v969_v42 = vpop.eup %968 }
 0x975   :  { %v532_v43 = vmul.f32 %v969_v42, %v1038_v6 }
 0x977   :  { %v533_v45 = vadd.f32 %v532_v43, %v1043_v10 }
 0x979   :  { %536 = vrot.lane.b32.xlu2 %v533_v45, %s1003_s18  ;;  %v534_v8 = vmul.f32 %v533_v45, %v450_v57 }
 0x9d3   :  { %v537_v46 = vpop.permute.xlu2 %536 }
 0x9d4   :  { %v539_v51 = vmul.f32 %v537_v46, %v533_v45 }
 0x9d6   :  { %541 = vrot.lane.b32.xlu1 %v539_v51, %s1004_s19 }
 0x9e4   :  { %v147_v35 = vpop.f32.mrf.mxu0 }
 0x9e5   :  { %v516_v52 = vpop.permute.xlu1 %515  ;;  %v148_v36 = vadd.f32 %v1036_v4, %v147_v35 }
 0x9e6   :  { %v518_v7 = vmul.f32 %v516_v52, %v512_v40 }
 0x9e7   :  { %v159_v39 = vmul.f32 %v148_v36, %v1038_v6 }
 0x9e8   :  { %520 = vrot.lane.b32.xlu0 %v518_v7, %s1004_s19 }
 0xa48   :  { %v542_v9 = vpop.permute.xlu1 %541 }
 0xa49   :  { %v544_v11 = vadd.f32 %v542_v9, %v534_v8 }
 0xa4b   :  { %970 = vtanh.f32 %v544_v11 }
 0xa51   :  { %v971_v12 = vpop.eup %970 }
 0xa52   :  { %547 = vrot.lane.b32.xlu0 %v971_v12, %s1003_s18 }
 0xa5a   :  { %v521_v14 = vpop.permute.xlu0 %520 }
 0xa5b   :  { %v523_v15 = vadd.f32 %v521_v14, %v513_v13 }
 0xa5d   :  { %972 = vtanh.f32 %v523_v15 }
 0xa63   :  { %v973_v16 = vpop.eup %972 }
 0xa64   :  { %526 = vrot.lane.b32.xlu2 %v973_v16, %s1003_s18 }
 0xabe   :  { %v527_v17 = vpop.permute.xlu2 %526 }
 0xabf   :  { %v529_v18 = vmul.f32 %v527_v17, %v512_v40 }
 0xac1   :  { %556 = vrot.lane.b32.xlu2 %v529_v18, %s1003_s18 }
 0xac4   :  { %v548_v19 = vpop.permute.xlu0 %547 }
 0xac5   :  { %v550_v22 = vmul.f32 %v548_v19, %v533_v45 }
 0xac7   :  { %552 = vrot.lane.b32.xlu1 %v550_v22, %s1004_s19 }
 0xb1b   :  { %v557_v24 = vpop.permute.xlu2 %556 }
 0xb39   :  { %v553_v25 = vpop.permute.xlu1 %552 }
 0xb3a   :  { %v559_v27 = vsel %vm179_vm8, %v553_v25, %v557_v24 }
 0xb3b   :  { %924 = vmatmul.msk.f32.vlgmr.msra.gmra.mxu3 %vm181_vm9, %v559_v27  ;;  %925 = vmatmul.msk.f32.vlgmr.msrb.gmra.mxu1 %vm181_vm9, %v559_v27 }
 0xbb8   :  { %v600_v34 = vpop.f32.mrf.mxu1 }
 0xbb9   :  { %v624_v37 = vadd.f32 %v600_v34, %v158_v33  ;;  %v81_v33 = vld [vmem:[%s1449_s0 + $0x38] sm:$0xff] }
 0xbba   :  { %915 = vmatmul.msk.f32.gmra.mxu0 %vm83_vm1, %v81_v33 }
 0xbbb   :  { %974 = vtanh.f32 %v624_v37 }
 0xbbe   :  { %v580_v38 = vpop.f32.mrf.mxu3 }
 0xbbf   :  { %v603_v41 = vadd.f32 %v580_v38, %v1227_v59 }
 0xbc1   :  { %v975_v44 = vpop.eup %974  ;;  %976 = vtanh.f32 %v603_v41 }
 0xbc2   :  { %v626_v47 = vmul.f32 %v975_v44, %v1038_v6 }
 0xbc4   :  { %v627_v48 = vadd.f32 %v626_v47, %v1043_v10 }
 0xbc6   :  { %630 = vrot.lane.b32.xlu1 %v627_v48, %s1003_s18  ;;  %v628_v63 = vmul.f32 %v627_v48, %v544_v11 }
 0xbc7   :  { %v977_v49 = vpop.eup %976 }
 0xbc8   :  { %v605_v50 = vmul.f32 %v977_v49, %v1038_v6 }
 0xbca   :  { %v606_v53 = vadd.f32 %v605_v50, %v1043_v10 }
 0xbcc   :  { %609 = vrot.lane.b32.xlu0 %v606_v53, %s1003_s18  ;;  %v607_v58 = vmul.f32 %v606_v53, %v523_v15 }
 0xc37   :  { %v150_v41 = vpop.f32.mrf.mxu0 }
 0xc38   :  { %v631_v54 = vpop.permute.xlu1 %630  ;;  %v151_v44 = vadd.f32 %v1036_v4, %v150_v41 }
 0xc39   :  { %v633_v55 = vmul.f32 %v631_v54, %v627_v48 }
 0xc3a   :  { %v160_v47 = vmul.f32 %v151_v44, %v1038_v6 }
 0xc3b   :  { %635 = vrot.lane.b32.xlu0 %v633_v55, %s1004_s19 }
 0xc3e   :  { %v610_v56 = vpop.permute.xlu0 %609 }
 0xc3f   :  { %v612_v57 = vmul.f32 %v610_v56, %v606_v53 }
 0xc41   :  { %614 = vrot.lane.b32.xlu2 %v612_v57, %s1004_s19 }
 0xc9b   :  { %v615_v60 = vpop.permute.xlu2 %614 }
 0xc9c   :  { %v617_v61 = vadd.f32 %v615_v60, %v607_v58 }
 0xc9e   :  { %978 = vtanh.f32 %v617_v61 }
 0xca4   :  { %v979_v62 = vpop.eup %978 }
 0xca5   :  { %620 = vrot.lane.b32.xlu1 %v979_v62, %s1003_s18 }
 0xcad   :  { %v636_v0 = vpop.permute.xlu0 %635 }
 0xcae   :  { %v638_v1 = vadd.f32 %v636_v0, %v628_v63 }
 0xcb0   :  { %980 = vtanh.f32 %v638_v1 }
 0xcb6   :  { %v981_v2 = vpop.eup %980 }
 0xcb7   :  { %641 = vrot.lane.b32.xlu2 %v981_v2, %s1003_s18 }
 0xd11   :  { %v642_v3 = vpop.permute.xlu2 %641 }
 0xd12   :  { %v644_v5 = vmul.f32 %v642_v3, %v627_v48 }
 0xd14   :  { %646 = vrot.lane.b32.xlu0 %v644_v5, %s1004_s19 }
 0xd17   :  { %v621_v20 = vpop.permute.xlu1 %620 }
 0xd18   :  { %v623_v21 = vmul.f32 %v621_v20, %v606_v53 }
 0xd1a   :  { %650 = vrot.lane.b32.xlu1 %v623_v21, %s1003_s18 }
 0xd86   :  { %v647_v30 = vpop.permute.xlu0 %646 }
 0xd8c   :  { %v651_v31 = vpop.permute.xlu1 %650 }
 0xd8d   :  { %v653_v32 = vsel %vm179_vm8, %v647_v30, %v651_v31 }
 0xd8e   :  { %926 = vmatmul.msk.f32.vlgmr.msrb.gmra.mxu2 %vm181_vm9, %v653_v32  ;;  %927 = vmatmul.msk.f32.vlgmr.msrb.gmra.mxu3 %vm181_vm9, %v653_v32 }
 0xe11   :  { %v674_v40 = vpop.f32.mrf.mxu2  ;;  %v694_v42 = vpop.f32.mrf.mxu3 }
 0xe12   :  { %v697_v43 = vadd.f32 %v674_v40, %v1227_v59  ;;  %v718_v45 = vadd.f32 %v694_v42, %v159_v39 }
 0xe14   :  { %982 = vtanh.f32 %v697_v43 }
 0xe15   :  { %984 = vtanh.f32 %v718_v45 }
 0xe1a   :  { %v983_v46 = vpop.eup %982 }
 0xe1b   :  { %v985_v51 = vpop.eup %984  ;;  %v699_v52 = vmul.f32 %v983_v46, %v1038_v6 }
 0xe1c   :  { %v720_v7 = vmul.f32 %v985_v51, %v1038_v6 }
 0xe1d   :  { %v700_v8 = vadd.f32 %v699_v52, %v1043_v10  ;;  %v936_v52 = vld [vmem:[%s1448_s2 + $0x8] ss:$0 sm:$0xff] }
 0xe1e   :  { %v721_v9 = vadd.f32 %v720_v7, %v1043_v10 }
 0xe1f   :  { %703 = vrot.lane.b32.xlu2 %v700_v8, %s1003_s18  ;;  %v701_v15 = vmul.f32 %v700_v8, %v617_v61 }
 0xe20   :  { %724 = vrot.lane.b32.xlu0 %v721_v9, %s1003_s18  ;;  %v722_v17 = vmul.f32 %v721_v9, %v638_v1 }
 0xe79   :  { %v704_v11 = vpop.permute.xlu2 %703 }
 0xe7a   :  { %v706_v12 = vmul.f32 %v704_v11, %v700_v8 }
 0xe7c   :  { %708 = vrot.lane.b32.xlu1 %v706_v12, %s1004_s19 }
 0xe92   :  { %v725_v13 = vpop.permute.xlu0 %724 }
 0xe93   :  { %v727_v14 = vmul.f32 %v725_v13, %v721_v9 }
 0xe95   :  { %729 = vrot.lane.b32.xlu2 %v727_v14, %s1004_s19 }
 0xeee   :  { %v709_v16 = vpop.permute.xlu1 %708 }
 0xeef   :  { %v711_v18 = vadd.f32 %v709_v16, %v701_v15  ;;  %v730_v19 = vpop.permute.xlu2 %729 }
 0xef0   :  { %v732_v22 = vadd.f32 %v730_v19, %v722_v17  ;;  %v937_v17 = vld [vmem:[%s1448_s2 + $0x9] ss:$0 sm:$0xff] }
 0xef1   :  { %986 = vtanh.f32 %v711_v18 }
 0xef2   :  { %988 = vtanh.f32 %v732_v22 }
 0xef7   :  { %v987_v23 = vpop.eup %986 }
 0xef8   :  { %v989_v24 = vpop.eup %988  ;;  %714 = vrot.lane.b32.xlu0 %v987_v23, %s1003_s18 }
 0xef9   :  { %735 = vrot.lane.b32.xlu1 %v989_v24, %s1003_s18 }
 0xf6a   :  { %v715_v25 = vpop.permute.xlu0 %714 }
 0xf6b   :  { %v736_v27 = vpop.permute.xlu1 %735  ;;  %v717_v28 = vmul.f32 %v715_v25, %v700_v8 }
 0xf6c   :  { %v738_v29 = vmul.f32 %v736_v27, %v721_v9 }
 0xf6d   :  { %744 = vrot.lane.b32.xlu0 %v717_v28, %s1003_s18 }
 0xf6e   :  { %740 = vrot.lane.b32.xlu2 %v738_v29, %s1004_s19 }
 0xfc8   :  { %v741_v34 = vpop.permute.xlu2 %740 }
 0xfdf   :  { %v745_v37 = vpop.permute.xlu0 %744 }
 0xfe0   :  { %v747_v38 = vsel %vm179_vm8, %v741_v34, %v745_v37 }
 0xfe1   :  { %928 = vmatmul.msk.f32.vlgmr.msrb.gmra.mxu0 %vm181_vm9, %v747_v38  ;;  %929 = vmatmul.msk.f32.vlgmr.msra.gmra.mxu1 %vm181_vm9, %v747_v38 }
0x105e   :  { %v768_v48 = vpop.f32.mrf.mxu0  ;;  %v788_v49 = vpop.f32.mrf.mxu1 }
0x105f   :  { %v791_v50 = vadd.f32 %v768_v48, %v1227_v59  ;;  %v812_v53 = vadd.f32 %v788_v49, %v160_v47 }
0x1061   :  { %990 = vtanh.f32 %v791_v50 }
0x1062   :  { %992 = vtanh.f32 %v812_v53 }
0x1067   :  { %v991_v54 = vpop.eup %990 }
0x1068   :  { %v993_v55 = vpop.eup %992  ;;  %v793_v56 = vmul.f32 %v991_v54, %v1038_v6 }
0x1069   :  { %v814_v57 = vmul.f32 %v993_v55, %v1038_v6 }
0x106a   :  { %v794_v58 = vadd.f32 %v793_v56, %v1043_v10 }
0x106b   :  { %v815_v60 = vadd.f32 %v814_v57, %v1043_v10 }
0x106c   :  { %797 = vrot.lane.b32.xlu1 %v794_v58, %s1003_s18  ;;  %v795_v5 = vmul.f32 %v794_v58, %v711_v18 }
0x106d   :  { %818 = vrot.lane.b32.xlu2 %v815_v60, %s1003_s18  ;;  %v816_v0 = vmul.f32 %v815_v60, %v732_v22 }
0x10c7   :  { %v819_v4 = vpop.permute.xlu2 %818 }
0x10c8   :  { %v821_v61 = vmul.f32 %v819_v4, %v815_v60 }
0x10ca   :  { %823 = vrot.lane.b32.xlu1 %v821_v61, %s1004_s19 }
0x10de   :  { %v798_v62 = vpop.permute.xlu1 %797 }
0x10df   :  { %v800_v63 = vmul.f32 %v798_v62, %v794_v58 }
0x10e1   :  { %802 = vrot.lane.b32.xlu0 %v800_v63, %s1004_s19 }
0x113c   :  { %v824_v1 = vpop.permute.xlu1 %823 }
0x113d   :  { %v826_v2 = vadd.f32 %v824_v1, %v816_v0 }
0x113f   :  { %994 = vtanh.f32 %v826_v2 }
0x1145   :  { %v995_v3 = vpop.eup %994 }
0x1146   :  { %829 = vrot.lane.b32.xlu0 %v995_v3, %s1003_s18 }
0x1153   :  { %v803_v20 = vpop.permute.xlu0 %802 }
0x1154   :  { %v805_v21 = vadd.f32 %v803_v20, %v795_v5 }
0x1156   :  { %996 = vtanh.f32 %v805_v21 }
0x115c   :  { %v997_v26 = vpop.eup %996 }
0x115d   :  { %808 = vrot.lane.b32.xlu2 %v997_v26, %s1003_s18 }
0x11b7   :  { %v809_v30 = vpop.permute.xlu2 %808 }
0x11b8   :  { %v830_v31 = vpop.permute.xlu0 %829  ;;  %v811_v32 = vmul.f32 %v809_v30, %v794_v58 }
0x11b9   :  { %v832_v35 = vmul.f32 %v830_v31, %v815_v60 }
0x11ba   :  { %838 = vrot.lane.b32.xlu2 %v811_v32, %s1003_s18 }
0x11bb   :  { %834 = vrot.lane.b32.xlu1 %v832_v35, %s1004_s19 }
0x1214   :  { %v839_v36 = vpop.permute.xlu2 %838 }
0x122d   :  { %v835_v39 = vpop.permute.xlu1 %834 }
0x122e   :  { %v841_v40 = vsel %vm179_vm8, %v835_v39, %v839_v36 }
0x122f   :  { %930 = vmatmul.msk.f32.vlgmr.msra.gmra.mxu2 %vm181_vm9, %v841_v40 }
0x12b2   :  { %v862_v42 = vpop.f32.mrf.mxu2 }
0x12b3   :  { %v865_v43 = vadd.f32 %v862_v42, %v1227_v59 }
0x12b5   :  { %998 = vtanh.f32 %v865_v43 }
0x12bb   :  { %v999_v45 = vpop.eup %998 }
0x12bc   :  { %v867_v46 = vmul.f32 %v999_v45, %v1038_v6 }
0x12be   :  { %v868_v51 = vadd.f32 %v867_v46, %v1043_v10 }
0x12c0   :  { %871 = vrot.lane.b32.xlu0 %v868_v51, %s1003_s18  ;;  %v869_v9 = vmul.f32 %v868_v51, %v805_v21 }
0x12c8   :  { %888 = vrot.lane.b32.xlu0 %v936_v52, %s1005_s20 }
0x1332   :  { %v872_v7 = vpop.permute.xlu0 %871 }
0x1333   :  { %v874_v8 = vmul.f32 %v872_v7, %v868_v51 }
0x1335   :  { %876 = vrot.lane.b32.xlu1 %v874_v8, %s1004_s19 }
0x133a   :  { %v889_v10 = vpop.permute.xlu0 %888 }
0x13a7   :  { %v877_v59 = vpop.permute.xlu1 %876 }
0x13a8   :  { %v879_v11 = vadd.f32 %v877_v59, %v869_v9 }
0x13aa   :  { %1000 = vtanh.f32 %v879_v11 }
0x13b0   :  { %v1001_v12 = vpop.eup %1000 }
0x13b1   :  { %882 = vrot.lane.b32.xlu2 %v1001_v12, %s1003_s18 }
0x140b   :  { %v883_v6 = vpop.permute.xlu2 %882 }
0x140c   :  { %v885_v13 = vmul.f32 %v883_v6, %v868_v51 }
0x140e   :  { %v891_v14 = vmul.f32 %v889_v10, %v885_v13 }
0x1410   :  { %893 = vrot.lane.b32.xlu1 %v891_v14, %s1004_s19 }
0x1482   :  { %v894_v15 = vpop.permute.xlu1 %893 }
0x1483   :  { %v896_v16 = vsel %vm179_vm8, %v894_v15, 0.0 }
0x1484   :  { %897 = vadd.xlane.f32.xlu2 %v896_v16 }
0x14f7   :  { %v898_v18 = vpop.xlane.xlu2 %897 }
0x14f8   :  { %v900_v19 = vadd.f32 %v937_v17, %v898_v18 }
0x14fa   :  { %902 = vst.msk [vmem:[%s1451_s3] sm:$0xff] %vm901_vm10, %v900_v19 }

</bundles_post_ra>
